<compile_context>
chip_gen: v7x
topology: tpu7x:2x2x1
jax: 0.10.0
libtpu: 0.0.40
codegen_flags: <defaults>
</compile_context>

<pallas_src>
import math
from functools import partial
from typing import NamedTuple

import jax
import jax.numpy as jnp
from jax.experimental import pallas as pl
from jax.experimental.pallas import tpu as pltpu


def _round_up(x: int, m: int) -> int:
    return ((x + m - 1) // m) * m


class _Plan(NamedTuple):
    op_dtype: str      # MXU operand dtype ("int8" / "float8_e4m3fn" / "bfloat16")
    acc_dtype: str     # MXU accumulator dtype ("int32" / "float32")
    tm: int
    tn: int
    tk: int
    single_pass: bool  # True -> whole K fits one VMEM tile (2-D grid, no scratch)
    vmem_limit: int    # 0 -> leave default scoped VMEM limit


def _make_plan(M: int, N: int, K: int) -> _Plan:
    """Pick operand dtype, tile sizes and VMEM budget for the current TPU."""
    kind = jax.devices()[0].device_kind.lower()
    is_v7x = ("v7" in kind) or ("7x" in kind)
    if is_v7x:
        # v7x MXU: bf16 + fp8 only (no int). +/-1 is exact in fp8 e4m3.
        op_dtype, acc_dtype = "float8_e4m3fn", "float32"
        budget, vmem_limit = 40 << 20, 48 << 20           # 64 MiB physical VMEM / TC
    elif ("v4" in kind) or ("v5" in kind) or ("v6" in kind):
        # int8 MXU path: +/-1 exact, int32 accumulation exact, half the HBM bytes.
        op_dtype, acc_dtype = "int8", "int32"
        budget, vmem_limit = 80 << 20, 100 << 20          # 128 MiB physical VMEM
    else:
        # Unknown chip: conservative bf16 path, default scoped VMEM.
        op_dtype, acc_dtype = "bfloat16", "float32"
        budget, vmem_limit = 10 << 20, 0

    op_bytes = jnp.dtype(op_dtype).itemsize
    acc_bytes = jnp.dtype(acc_dtype).itemsize
    sub = 8 * (4 // op_bytes)           # sublane multiple: 32 for 8-bit, 16 for bf16

    tm = min(512, _round_up(M, sub))
    Mp = _round_up(M, tm)
    tn = min(1024, _round_up(N, 128))
    if is_v7x and Mp // tm == 1 and N > 128:
        # Megacore: guarantee >=2 blocks on a parallel axis so both TCs get work.
        tn = min(tn, _round_up((N + 1) // 2, 128))
    Kp = _round_up(K, 128)

    # Fixed VMEM cost at this (tm, tn): double-buffered f32 output + f32 bias.
    fixed = 2 * tm * tn * 4 + 2 * tn * 4
    if 2 * (tm + tn) * Kp * op_bytes + fixed <= budget:
        # Whole reduction fits: single MXU pass per (i, j) tile, no scratch.
        return _Plan(op_dtype, acc_dtype, tm, tn, Kp, True, vmem_limit)

    avail = budget - fixed - tm * tn * acc_bytes
    tk = (avail // (2 * (tm + tn) * op_bytes)) // 128 * 128
    tk = max(512, min(tk, Kp))
    return _Plan(op_dtype, acc_dtype, tm, tn, tk, False, vmem_limit)


def _kernel_single(x_ref, w_ref, b_ref, o_ref, *, acc_dtype):
    # One MXU pass over the full (padded) K: no scratch, no pl.when.
    acc = jnp.dot(x_ref[...], w_ref[...], preferred_element_type=acc_dtype)
    o_ref[...] = acc.astype(jnp.float32) + b_ref[...]


def _kernel_multi(x_ref, w_ref, b_ref, o_ref, acc_ref, *, acc_dtype):
    # K-axis reduction: init accumulator on the first K step.
    @pl.when(pl.program_id(2) == 0)
    def _():
        acc_ref[...] = jnp.zeros_like(acc_ref)

    acc_ref[...] += jnp.dot(x_ref[...], w_ref[...],
                            preferred_element_type=acc_dtype)

    # Finalize on the last K step: add fp bias, cast, store.
    @pl.when(pl.program_id(2) == pl.num_programs(2) - 1)
    def _():
        o_ref[...] = acc_ref[...].astype(jnp.float32) + b_ref[...]


@partial(jax.jit, static_argnames=("plan",))
def _binarized_linear_impl(x, weight, bias, *, plan: _Plan):
    M, K = x.shape
    N, K2 = weight.shape
    assert K == K2

    op_dtype = jnp.dtype(plan.op_dtype)
    acc_dtype = jnp.dtype(plan.acc_dtype)
    tm, tn, tk = plan.tm, plan.tn, plan.tk
    Mp, Np, Kp = _round_up(M, tm), _round_up(N, tn), _round_up(K, tk)

    # Binarize both operands once here (XLA fuses it with the pad/transpose pass)
    # and stream them at 1-2 bytes/elem.  Zero K-padding of the weight makes every
    # padded contribution exactly 0 regardless of the x padding value.
    x_b = jnp.where(x >= 0, 1.0, -1.0).astype(op_dtype)                 # (M, K)
    w_b = jnp.where(weight >= 0, 1.0, -1.0).astype(op_dtype).T          # (K, N)
    x_p = jnp.pad(x_b, ((0, Mp - M), (0, Kp - K)))
    w_p = jnp.pad(w_b, ((0, Kp - K), (0, Np - N)))
    b_p = jnp.pad(bias.astype(jnp.float32), (0, Np - N)).reshape(1, Np)

    grid_m, grid_n, grid_k = Mp // tm, Np // tn, Kp // tk
    op_bytes = op_dtype.itemsize
    cost = pl.CostEstimate(
        flops=2 * Mp * Np * Kp,
        transcendentals=0,
        bytes_accessed=(Mp * Kp * op_bytes * grid_n      # x re-streamed per N block
                        + Kp * Np * op_bytes * grid_m    # w re-streamed per M block
                        + Mp * Np * 4                    # f32 output writeback
                        + Np * 4 * grid_m),              # f32 bias
    )
    vmem_limit = plan.vmem_limit if plan.vmem_limit else None

    if plan.single_pass:
        out = pl.pallas_call(
            partial(_kernel_single, acc_dtype=acc_dtype),
            out_shape=jax.ShapeDtypeStruct((Mp, Np), jnp.float32),
            grid_spec=pltpu.PrefetchScalarGridSpec(
                num_scalar_prefetch=0,
                grid=(grid_m, grid_n),
                in_specs=[
                    pl.BlockSpec((tm, Kp), lambda i, j: (i, 0)),   # binarized x
                    pl.BlockSpec((Kp, tn), lambda i, j: (0, j)),   # binarized w^T
                    pl.BlockSpec((1, tn), lambda i, j: (0, j)),    # f32 bias
                ],
                out_specs=pl.BlockSpec((tm, tn), lambda i, j: (i, j)),
            ),
            compiler_params=pltpu.CompilerParams(
                dimension_semantics=("parallel", "parallel"),
                vmem_limit_bytes=vmem_limit),
            cost_estimate=cost,
        )(x_p, w_p, b_p)
    else:
        out = pl.pallas_call(
            partial(_kernel_multi, acc_dtype=acc_dtype),
            out_shape=jax.ShapeDtypeStruct((Mp, Np), jnp.float32),
            grid_spec=pltpu.PrefetchScalarGridSpec(
                num_scalar_prefetch=0,
                grid=(grid_m, grid_n, grid_k),
                in_specs=[
                    pl.BlockSpec((tm, tk), lambda i, j, k: (i, k)),   # binarized x
                    pl.BlockSpec((tk, tn), lambda i, j, k: (k, j)),   # binarized w^T
                    pl.BlockSpec((1, tn), lambda i, j, k: (0, j)),    # f32 bias
                ],
                out_specs=pl.BlockSpec((tm, tn), lambda i, j, k: (i, j)),
                scratch_shapes=[pltpu.VMEM((tm, tn), acc_dtype)],
            ),
            compiler_params=pltpu.CompilerParams(
                dimension_semantics=("parallel", "parallel", "arbitrary"),
                vmem_limit_bytes=vmem_limit),
            cost_estimate=cost,
        )(x_p, w_p, b_p)

    return out[:M, :N]


def binarized_linear(x, weight, bias):
    """x: (B, K), weight: (N, K), bias: (N,) -> (B, N) float32."""
    plan = _make_plan(x.shape[0], weight.shape[0], weight.shape[1])
    return _binarized_linear_impl(x, weight, bias, plan=plan)


def init_params(key, in_features, out_features):
    """Deterministic init matching nn.Linear.reset_parameters semantics."""
    kw, kb = jax.random.split(key)
    # kaiming_uniform_(a=sqrt(5)) => bound = 1/sqrt(fan_in); same bound for bias.
    bound = 1.0 / math.sqrt(in_features)
    weight = jax.random.uniform(
        kw, (out_features, in_features), jnp.float32, -bound, bound)
    bias = jax.random.uniform(
        kb, (out_features,), jnp.float32, -bound, bound)
    return weight, bias


if __name__ == "__main__":
    key = jax.random.PRNGKey(0)
    k_x, k_p = jax.random.split(key)

    # Small shapes that still exercise padding (K: 96 -> 128, N: 160 -> 256 lanes).
    batch, in_features, out_features = 16, 96, 160
    x = jax.random.normal(k_x, (batch, in_features), jnp.float32)
    weight, bias = init_params(k_p, in_features, out_features)

    out = binarized_linear(x, weight, bias)
    out = jax.block_until_ready(out)

    # Pure-JAX reference (same binarized-linear semantics, sign(0) -> +1).
    ref = (jnp.where(x >= 0, 1.0, -1.0) @ jnp.where(weight >= 0, 1.0, -1.0).T
           + bias[None, :])
    assert out.shape == (batch, out_features)
    assert jnp.allclose(out, ref, atol=1e-5), "mismatch vs reference"

    print("KERNEL_OK")
</pallas_src>

<mosaic_0001>
module attributes {stable_mosaic.version = 11 : i64} {
  func.func @_kernel_single(%arg0: i32, %arg1: i32, %arg2: memref<16x128xbf16, #tpu.memory_space<vmem>>, %arg3: memref<128x256xbf16, #tpu.memory_space<vmem>>, %arg4: memref<1x256xf32, #tpu.memory_space<vmem>>, %arg5: memref<16x256xf32, #tpu.memory_space<vmem>>) attributes {dimension_semantics = [#tpu.dimension_semantics<parallel>, #tpu.dimension_semantics<parallel>], iteration_bounds = array<i64: 1, 1>, scalar_prefetch = 0 : i64, scratch_operands = 0 : i64, tpu.core_type = #tpu.core_type<tc>, window_params = [{transform_indices = @transform_0, window_bounds = array<i64: 16, 128>}, {transform_indices = @transform_1, window_bounds = array<i64: 128, 256>}, {transform_indices = @transform_2, window_bounds = array<i64: 1, 256>}, {transform_indices = @transform_3, window_bounds = array<i64: 16, 256>}]} {
    %c0 = arith.constant 0 : index
    %c0_0 = arith.constant 0 : index
    %0 = vector.load %arg2[%c0, %c0_0] : memref<16x128xbf16, #tpu.memory_space<vmem>>, vector<16x128xbf16>
    %c0_1 = arith.constant 0 : index
    %c0_2 = arith.constant 0 : index
    %1 = vector.load %arg3[%c0_1, %c0_2] : memref<128x256xbf16, #tpu.memory_space<vmem>>, vector<128x256xbf16>
    %cst = arith.constant dense<0.000000e+00> : vector<16x256xf32>
    %2 = tpu.matmul %0, %1, %cst {dimension_numbers = #tpu.dot_dimension_numbers<[1], [0], [0], [1], [0, 0, 1, 1], [], []>} : vector<16x128xbf16>, vector<128x256xbf16>, vector<16x256xf32> -> vector<16x256xf32>
    %c0_3 = arith.constant 0 : index
    %c0_4 = arith.constant 0 : index
    %3 = vector.load %arg4[%c0_3, %c0_4] : memref<1x256xf32, #tpu.memory_space<vmem>>, vector<1x256xf32>
    %4 = vector.broadcast %3 : vector<1x256xf32> to vector<16x256xf32>
    %5 = arith.addf %2, %4 : vector<16x256xf32>
    %c0_5 = arith.constant 0 : index
    %c0_6 = arith.constant 0 : index
    %6 = vector.load %arg5[%c0_5, %c0_6] : memref<16x256xf32, #tpu.memory_space<vmem>>, vector<16x256xf32>
    tpu.vector_store %arg5[%c0_5, %c0_6], %5 {strides = array<i32>} : memref<16x256xf32, #tpu.memory_space<vmem>>, vector<16x256xf32>,
    return
  }
  func.func @transform_0(%arg0: i32, %arg1: i32) -> (i32, i32) {
    %c0_i32 = arith.constant 0 : i32
    %c0_i32_0 = arith.constant 0 : i32
    return %arg0, %c0_i32 : i32, i32
  }
  func.func @transform_1(%arg0: i32, %arg1: i32) -> (i32, i32) {
    %c0_i32 = arith.constant 0 : i32
    %c0_i32_0 = arith.constant 0 : i32
    return %c0_i32, %arg1 : i32, i32
  }
  func.func @transform_2(%arg0: i32, %arg1: i32) -> (i32, i32) {
    %c0_i32 = arith.constant 0 : i32
    %c0_i32_0 = arith.constant 0 : i32
    return %c0_i32, %arg1 : i32, i32
  }
  func.func @transform_3(%arg0: i32, %arg1: i32) -> (i32, i32) {
    %c0_i32 = arith.constant 0 : i32
    return %arg0, %arg1 : i32, i32
  }
}

</mosaic_0001>

<bundles_post_ra>
// kernel: _binarized_linear_impl.1
= control target key start
LH: loop header
LB: loop body
LE: loop exit
PB: predicated region body
PF: predicated region fallthrough
CT: control target
= control target key end

     0   :  { %v265_v2 = vmov 0   ;;  %s355_s0 = inlined_call_operand.vmem [shape: bf16[16,128], index: 0, kind: input, shape index: {}]   ;;  %s356_s1 = inlined_call_operand.vmem [shape: bf16[128,256], index: 1, kind: input, shape index: {}]   ;;  %s357_s2 = inlined_call_operand.vmem [shape: f32[1,256], index: 2, kind: input, shape index: {}]   ;;  %s358_s3 = inlined_call_operand.hbm [shape: f32[16,256], index: 3, kind: output, shape index: {}]  }
   0x1   :  { %v216_v0 = vld [vmem:[%s356_s1 + $0x4] ss:$8 sps:$4 sm:$0xff]   ;;  %v218_v1 = vld [vmem:[%s356_s1] ss:$8 sps:$4 sm:$0xff]   ;;  %164 = vmatprep.mubr.bf16.mxu0 %v265_v2  ;;  %v219_v3 = vld [vmem:[%s356_s1 + $0x14] ss:$8 sps:$4 sm:$0xff]  }
   0x2   :  { %132 = vmatprep.subr.bf16.mxu0 %v216_v0  ;;  %v221_v4 = vld [vmem:[%s356_s1 + $0x10] ss:$8 sps:$4 sm:$0xff]   ;;  %v222_v5 = vld [vmem:[%s356_s1 + $0x24] ss:$8 sps:$4 sm:$0xff]   ;;  %v224_v6 = vld [vmem:[%s356_s1 + $0x20] ss:$8 sps:$4 sm:$0xff]  }
   0x3   :  { %133 = vmatpush1.bf16.msra.mxu0 %v218_v1  ;;  %v225_v7 = vld [vmem:[%s356_s1 + $0x34] ss:$8 sps:$4 sm:$0xff]   ;;  %v227_v8 = vld [vmem:[%s356_s1 + $0x30] ss:$8 sps:$4 sm:$0xff]   ;;  %v228_v9 = vld [vmem:[%s356_s1 + $0x44] ss:$8 sps:$4 sm:$0xff]  }
   0x4   :  { %134 = vmatprep.subr.bf16.mxu0 %v219_v3 }
   0x7   :  { %135 = vmatpush1.bf16.msra.mxu0 %v221_v4 }
   0x8   :  { %136 = vmatprep.subr.bf16.mxu0 %v222_v5 }
   0xb   :  { %137 = vmatpush1.bf16.msra.mxu0 %v224_v6 }
   0xc   :  { %138 = vmatprep.subr.bf16.mxu0 %v225_v7 }
   0xd   :  { %8 = vsyncpa [#allocation3], 0  ;;  %v230_v10 = vld [vmem:[%s356_s1 + $0x40] ss:$8 sps:$4 sm:$0xff]   ;;  %v231_v11 = vld [vmem:[%s356_s1 + $0x54] ss:$8 sps:$4 sm:$0xff]   ;;  %v36_v18 = vlaneseq }
   0xe   :  { %v233_v12 = vld [vmem:[%s356_s1 + $0x50] ss:$8 sps:$4 sm:$0xff]   ;;  %v234_v13 = vld [vmem:[%s356_s1 + $0x64] ss:$8 sps:$4 sm:$0xff]   ;;  %v236_v14 = vld [vmem:[%s356_s1 + $0x60] ss:$8 sps:$4 sm:$0xff]  }
   0xf   :  { %139 = vmatpush1.bf16.msra.mxu0 %v227_v8  ;;  %v237_v15 = vld [vmem:[%s356_s1 + $0x74] ss:$8 sps:$4 sm:$0xff]   ;;  %v239_v16 = vld [vmem:[%s356_s1 + $0x70] ss:$8 sps:$4 sm:$0xff]   ;;  %v240_v17 = vld [vmem:[%s355_s0] sm:$0xff]   ;;  %v37_v19 = vshrl.u32 %v36_v18, 7 }
  0x10   :  { %140 = vmatprep.subr.bf16.mxu0 %v228_v9  ;;  %v34_v21 = vld [vmem:[%s357_s2] sm:$0x3]  ;;  %s266_s21 = smov [#allocation2]  }
  0x11   :  { %v38_v20 = vsub.s32 0, %v37_v19  ;;  %v42_v22 = vsub.s32 1, %v37_v19  ;;  %s184_s1 = sshll.u32 %s266_s21, 4  ;;  %s185_s1 = int_to_ptr.vmem [resolvable:$true] %s184_s1 }
  0x12   :  { %s241_s0 = scalar_lea.vmem %s185_s1, 512  ;;  %p246_p1 = scmp.lt.s32.totalorder %s185_s1, %s185_s1 }
  0x13   :  { %141 = vmatpush1.bf16.msra.mxu0 %v230_v10  ;;  %v39_v23 = vrot.slane %v34_v21, %v38_v20  ;;  %v43_v24 = vrot.slane %v34_v21, %v42_v22  ;;  %p242_p0 = scmp.ne.s32.totalorder %s185_s1, %s241_s0  ;;  %p247_p2 = scmp.lt.s32.totalorder %s241_s0, %s241_s0 }
  0x14   :  { %142 = vmatprep.subr.bf16.mxu0 %v231_v11 }
  0x15   :  { %p248_p3 = por %p247_p2, %p246_p1 }
  0x17   :  { %143 = vmatpush1.bf16.msra.mxu0 %v233_v12  ;;  %p249_p4 = pnand %p248_p3, %p242_p0 }
  0x18   :  { %144 = vmatprep.subr.bf16.mxu0 %v234_v13 }
  0x1b   :  { %145 = vmatpush1.bf16.msra.mxu0 %v236_v14 }
  0x1c   :  { %146 = vmatprep.subr.bf16.mxu0 %v237_v15 }
  0x1f   :  { %147 = vmatpush1.bf16.msra.mxu0 %v239_v16 }
  0x22   :  { %165 = vmatmul.mubr.bf16.vlgmr.msra.gmra.mrb[0].mxu0 %v240_v17 }
  0xf5   :  { %v166_v25 = vpop.f32.mrb[0].mxu0 }
  0xf6   :  { %v167_v26 = vadd.f32 %v166_v25, %v39_v23  ;;  %v168_v27 = vpop.f32.mrb[1].mxu0 }
  0xf7   :  { %v169_v28 = vadd.f32 %v168_v27, %v43_v24  ;;  %v170_v29 = vpop.f32.mrb[2].mxu0 }
  0xf8   :  { %175 = vst [vmem:[#allocation2] sm:$0xff] %v167_v26  ;;  %v171_v30 = vadd.f32 %v170_v29, %v39_v23  ;;  %v172_v31 = vpop.f32.mrb[3].mxu0 }
  0xf9   :  { %176 = vst [vmem:[#allocation2 + $0x8] sm:$0xff] %v169_v28  ;;  %v173_v32 = vadd.f32 %v172_v31, %v43_v24 }
  0xfa   :  { %177 = vst [vmem:[#allocation2 + $0x10] sm:$0xff] %v171_v30 }
  0xfb   :  { %178 = vst [vmem:[#allocation2 + $0x18] sm:$0xff] %v173_v32 }
  0xfc   :  { %252 = shalt.err (!%p249_p4)
}
  0xfd   :  { %s253_s23 = scalar_lea.hbm %s358_s3, 512 }
  0xfe   :  { %p254_p5 = scmp.ne.s32.totalorder %s358_s3, %s253_s23  ;;  %p257_p6 = scmp.lt.u32.totalorder %s253_s23, %s358_s3 }
 0x100   :  { %p259_p7 = pnand %p257_p6, %p254_p5 }
 0x102   :  { %262 = shalt.err (!%p259_p7)
}
 0x103   :  { %s267_s28 = smov 256   ;;  %s268_s29 = smov 16  }
 0x104   :  { %190 = dma.vmem_to_hbm [thread:$0]  %s185_s1, 512, %s358_s3, [#allocation3], %s267_s28, %s267_s28, %s268_s29  }
 0x105   :  { %263 = dma.done.wait [#allocation3], 512  }
 0x106   :  { %264 = vsyncadd [#allocation3], 4294966784 }
 0x107   :  { %194 = vsyncpa [#allocation3], 1 }

</bundles_post_ra>
